<compile_context>
chip_gen: v7x
topology: tpu7x:2x2x1
jax: 0.10.0
libtpu: 0.0.40
codegen_flags: <defaults>
</compile_context>

<pallas_src>
import functools

import jax
import jax.numpy as jnp
from jax.experimental import pallas as pl
from jax.experimental.pallas import tpu as pltpu

BN_EPS = 1e-5   # nn.BatchNorm2d default


def _shift_lanes(a, d, period):
    """a[:, q] -> a[:, q + d], zeroed where (q mod period) + d leaves [0, period).

    Lane-axis pltpu.roll + iota mask; the mask doubles as 'same' zero padding and stops
    taps leaking across flattened-batch boundaries.  Only used when kernel_size > 1.
    """
    rolled = pltpu.roll(a, shift=-d, axis=1)
    lane = jax.lax.broadcasted_iota(jnp.int32, a.shape, 1)
    pos = lane % period
    ok = jnp.logical_and(pos + d >= 0, pos + d < period)
    return jnp.where(ok, rolled, jnp.zeros_like(rolled))


def _shift_sublanes(a, d, size):
    """a[r, :] -> a[r + d, :], zeroed where r + d leaves [0, size).  K > 1 only."""
    rolled = pltpu.roll(a, shift=-d, axis=0)
    row = jax.lax.broadcasted_iota(jnp.int32, a.shape, 0)
    ok = jnp.logical_and(row + d >= 0, row + d < size)
    return jnp.where(ok, rolled, jnp.zeros_like(rolled))


def shortcut1dts_kernel(x_ref, w1_ref, w2_ref, bias_ref, scal_ref, out_ref,
                        *, K, N, C1, L, C_out):
    p = (K - 1) // 2

    x2d = x_ref[...]                             # (C1, N*L), input dtype (MXU-native)

    # ---- conv_time (linear part): batch collapsed into lanes, one 2D dot per tap ----
    def time_tap(k):
        d = k - p
        xk = x2d if d == 0 else _shift_lanes(x2d, d, L)
        return jnp.dot(w1_ref[k], xk, preferred_element_type=jnp.float32)   # (C_out, N*L)

    y1 = time_tap(0)
    for k in range(1, K):
        y1 = y1 + time_tap(k)
    # y1[t, n*L + l] = sum_{c,k} w1[t, c, k] * x[n, c, l + k - p]          (f32)

    # ---- permute -> conv_spatial -> permute, folded into operand order ----
    # Regroup y1 so the contraction axis (l) is a clean lane axis and rows are (n, t):
    # N static lane-slices + one sublane concat (no transposes, no lane<->sublane reshape).
    y3 = bias_ref[...]                           # (N*C_out, C_out) combined conv biases, f32

    def spatial_tap(k):
        d = k - p
        yk = y1 if d == 0 else _shift_sublanes(y1, d, C_out)
        if N > 1:
            parts = [yk[:, n * L:(n + 1) * L] for n in range(N)]
            ykr = jnp.concatenate(parts, axis=0)                  # (N*C_out, L), rows (n, t)
        else:
            ykr = yk
        ykr = ykr.astype(w2_ref.dtype)           # keep MXU operands in the input dtype
        return jnp.dot(ykr, w2_ref[k], preferred_element_type=jnp.float32)

    for k in range(K):
        y3 = y3 + spatial_tap(k)
    # y3[n*C_out + t, m] == out[n, t, m] before BatchNorm.

    # ---- BatchNorm2d(1): training-mode stats over ALL elements (single channel), ----
    # ---- two-pass mean-shifted variance (biased), eps = 1e-5.                     ----
    inv_cnt = 1.0 / float(N * C_out * C_out)
    mean = jnp.sum(jnp.sum(y3, axis=1, keepdims=True), axis=0, keepdims=True) * inv_cnt
    cen = y3 - mean
    var = jnp.sum(jnp.sum(cen * cen, axis=1, keepdims=True), axis=0, keepdims=True) * inv_cnt
    gamma = scal_ref[0]
    beta = scal_ref[1]
    out_ref[...] = (cen * (jax.lax.rsqrt(var + BN_EPS) * gamma) + beta).astype(out_ref.dtype)


def shortcut1dts(x, w1, b1, w2, b2, gamma, beta):
    """Forward pass of ShortCut1DTS (training-mode BatchNorm statistics).

    x:  (N, in_channels[0], L) with L == in_channels[1]
    w1: (C_out, in_channels[0], K), b1: (C_out,)    -- conv_time
    w2: (C_out, in_channels[1], K), b2: (C_out,)    -- conv_spatial
    gamma, beta: scalars                            -- BatchNorm2d(1) affine params
    returns: (N, C_out, C_out)
    """
    N, C1, L = x.shape
    C_out, C1_w, K = w1.shape
    assert C1_w == C1
    assert w2.shape == (C_out, L, K), "conv_spatial needs in_channels[1] == time length"
    p = (K - 1) // 2
    dt = x.dtype

    # --- host-side layout plumbing only (tiny; weights/bias, no activation blow-up) ---
    x2d = jnp.transpose(x, (1, 0, 2)).reshape(C1, N * L)             # lane-dense input slab
    w1t = jnp.transpose(w1, (2, 0, 1)).astype(dt)                    # (K, C_out, C1)
    w2t = jnp.transpose(w2, (2, 1, 0)).astype(dt)                    # (K, L, C_out)

    # Combined conv bias:  conv_spatial(permute(conv_time(0))) + b2 is input-independent.
    b1p = jnp.pad(b1, (p, (K - 1) - p))
    taps = jnp.stack([b1p[k:k + C_out] for k in range(K)], axis=0)   # taps[k, t] = b1_at(t+k-p)
    B = jnp.einsum('mlk,kt->tm', w2, taps) + b2[None, :]             # (C_out, C_out) [t, m]
    bias_slab = jnp.tile(B, (N, 1)).astype(jnp.float32)              # (N*C_out, C_out), rows (n, t)

    scalars = jnp.stack([jnp.asarray(gamma, jnp.float32),
                         jnp.asarray(beta, jnp.float32)])            # (2,) -> SMEM

    flops = (2 * K * C_out * C1 * N * L            # conv_time
             + 2 * K * (N * C_out) * L * C_out     # conv_spatial
             + 8 * N * C_out * C_out)              # bias add + BatchNorm
    itemsize = jnp.dtype(dt).itemsize
    bytes_accessed = ((C1 * N * L + K * C_out * C1 + K * L * C_out) * itemsize
                      + (N * C_out * C_out + 2) * 4
                      + N * C_out * C_out * itemsize)

    kernel = functools.partial(shortcut1dts_kernel, K=K, N=N, C1=C1, L=L, C_out=C_out)
    out2d = pl.pallas_call(
        kernel,
        out_shape=jax.ShapeDtypeStruct((N * C_out, C_out), dt),
        grid=(1,),
        in_specs=[
            pl.BlockSpec((C1, N * L), lambda i: (0, 0)),
            pl.BlockSpec((K, C_out, C1), lambda i: (0, 0, 0)),
            pl.BlockSpec((K, L, C_out), lambda i: (0, 0, 0)),
            pl.BlockSpec((N * C_out, C_out), lambda i: (0, 0)),
            pl.BlockSpec(memory_space=pltpu.MemorySpace.SMEM),
        ],
        out_specs=pl.BlockSpec((N * C_out, C_out), lambda i: (0, 0)),
        compiler_params=pltpu.CompilerParams(dimension_semantics=("arbitrary",)),
        cost_estimate=pl.CostEstimate(flops=flops, transcendentals=1,
                                      bytes_accessed=bytes_accessed),
    )(x2d, w1t, w2t, bias_slab, scalars)

    return out2d.reshape(N, C_out, C_out)


# ----------------------------- pure-JAX reference ----------------------------------
def _conv1d_same_ref(x, w, b):
    N, C, L = x.shape
    O, _, K = w.shape
    pl_ = (K - 1) // 2
    pr_ = (K - 1) - pl_
    xp = jnp.pad(x, ((0, 0), (0, 0), (pl_, pr_)))
    out = jnp.zeros((N, O, L), jnp.float32)
    for t in range(K):
        out = out + jnp.einsum('oc,ncl->nol', w[:, :, t], xp[:, :, t:t + L])
    return out + b[None, :, None]


def _reference(x, w1, b1, w2, b2, gamma, beta):
    y = _conv1d_same_ref(x, w1, b1)            # (N, C_out, L)
    y = jnp.transpose(y, (0, 2, 1))            # (N, L, C_out)
    y = _conv1d_same_ref(y, w2, b2)            # (N, C_out, C_out)
    y = jnp.transpose(y, (0, 2, 1))            # (N, C_out, C_out)
    mu = jnp.mean(y)                           # BatchNorm2d(1): stats over all elements
    var = jnp.mean((y - mu) ** 2)
    return gamma * (y - mu) / jnp.sqrt(var + BN_EPS) + beta


if __name__ == "__main__":
    # ShortCut1DTS(in_channels=(4, 16), out_channels=8, kernel_size=1) on x: (2, 4, 16)
    N = 2
    in_channels = (4, 16)      # conv_time in-chans, conv_spatial in-chans (== time length L)
    C_out = 8
    K = 1                      # module default kernel_size
    C1, L = in_channels

    key = jax.random.PRNGKey(0)
    k1, k2, k3, k4, k5, k6, k7 = jax.random.split(key, 7)
    x = jax.random.normal(k1, (N, C1, L), jnp.float32)
    w1 = jax.random.normal(k2, (C_out, C1, K), jnp.float32) * 0.3
    b1 = jax.random.normal(k3, (C_out,), jnp.float32) * 0.1
    w2 = jax.random.normal(k4, (C_out, L, K), jnp.float32) * 0.2
    b2 = jax.random.normal(k5, (C_out,), jnp.float32) * 0.1
    gamma = 1.0 + 0.1 * jax.random.normal(k6, (), jnp.float32)
    beta = 0.1 * jax.random.normal(k7, (), jnp.float32)

    out = shortcut1dts(x, w1, b1, w2, b2, gamma, beta)
    out = jax.block_until_ready(out)

    ref = _reference(x, w1, b1, w2, b2, gamma, beta)
    assert out.shape == (N, C_out, C_out)
    assert jnp.allclose(out, ref, atol=1e-4, rtol=1e-4), "mismatch vs reference"

    print("KERNEL_OK")
</pallas_src>

<mosaic_0001>
module attributes {stable_mosaic.version = 11 : i64} {
  func.func @shortcut1dts_kernel(%arg0: i32, %arg1: memref<4x32xf32, #tpu.memory_space<vmem>>, %arg2: memref<1x8x4xf32, #tpu.memory_space<vmem>>, %arg3: memref<1x16x8xf32, #tpu.memory_space<vmem>>, %arg4: memref<16x8xf32, #tpu.memory_space<vmem>>, %arg5: memref<2xf32, #tpu.memory_space<smem>>, %arg6: memref<16x8xf32, #tpu.memory_space<vmem>>) attributes {dimension_semantics = [#tpu.dimension_semantics<arbitrary>], iteration_bounds = array<i64: 1>, scalar_prefetch = 0 : i64, scratch_operands = 0 : i64, tpu.core_type = #tpu.core_type<tc>, window_params = [{pipeline_mode = #tpu.pipeline_mode<synchronous>, transform_indices = @transform_0, window_bounds = array<i64: 4, 32>}, {pipeline_mode = #tpu.pipeline_mode<synchronous>, transform_indices = @transform_1, window_bounds = array<i64: 1, 8, 4>}, {pipeline_mode = #tpu.pipeline_mode<synchronous>, transform_indices = @transform_2, window_bounds = array<i64: 1, 16, 8>}, {pipeline_mode = #tpu.pipeline_mode<synchronous>, transform_indices = @transform_3, window_bounds = array<i64: 16, 8>}, {transform_indices = @transform_4, window_bounds = array<i64: 2>}, {pipeline_mode = #tpu.pipeline_mode<synchronous>, transform_indices = @transform_5, window_bounds = array<i64: 16, 8>}]} {
    %c0 = arith.constant 0 : index
    %c0_0 = arith.constant 0 : index
    %0 = vector.load %arg1[%c0, %c0_0] : memref<4x32xf32, #tpu.memory_space<vmem>>, vector<4x32xf32>
    %c0_1 = arith.constant 0 : index
    %c0_2 = arith.constant 0 : index
    %c0_3 = arith.constant 0 : index
    %1 = vector.load %arg2[%c0_1, %c0_2, %c0_3] : memref<1x8x4xf32, #tpu.memory_space<vmem>>, vector<1x8x4xf32>
    %2 = vector.shape_cast %1 : vector<1x8x4xf32> to vector<8x4xf32>
    %cst = arith.constant dense<0.000000e+00> : vector<8x32xf32>
    %3 = tpu.matmul %2, %0, %cst {dimension_numbers = #tpu.dot_dimension_numbers<[1], [0], [0], [1], [0, 0, 1, 1], [], []>} : vector<8x4xf32>, vector<4x32xf32>, vector<8x32xf32> -> vector<8x32xf32>
    %c0_4 = arith.constant 0 : index
    %c0_5 = arith.constant 0 : index
    %4 = vector.load %arg4[%c0_4, %c0_5] : memref<16x8xf32, #tpu.memory_space<vmem>>, vector<16x8xf32>
    %5 = vector.extract_strided_slice %3 {offsets = [0, 0], sizes = [8, 16], strides = [1, 1]} : vector<8x32xf32> to vector<8x16xf32>
    %6 = vector.extract_strided_slice %3 {offsets = [0, 16], sizes = [8, 16], strides = [1, 1]} : vector<8x32xf32> to vector<8x16xf32>
    %7 = tpu.concatenate %5, %6 in 0 : vector<8x16xf32>, vector<8x16xf32> -> vector<16x16xf32>
    %c0_6 = arith.constant 0 : index
    %c0_7 = arith.constant 0 : index
    %c0_8 = arith.constant 0 : index
    %8 = vector.load %arg3[%c0_6, %c0_7, %c0_8] : memref<1x16x8xf32, #tpu.memory_space<vmem>>, vector<1x16x8xf32>
    %9 = vector.shape_cast %8 : vector<1x16x8xf32> to vector<16x8xf32>
    %cst_9 = arith.constant dense<0.000000e+00> : vector<16x8xf32>
    %10 = tpu.matmul %7, %9, %cst_9 {dimension_numbers = #tpu.dot_dimension_numbers<[1], [0], [0], [1], [0, 0, 1, 1], [], []>} : vector<16x16xf32>, vector<16x8xf32>, vector<16x8xf32> -> vector<16x8xf32>
    %11 = arith.addf %4, %10 : vector<16x8xf32>
    %cst_10 = arith.constant dense<0.000000e+00> : vector<16xf32>
    %12 = vector.multi_reduction <add>, %11, %cst_10 [1] : vector<16x8xf32> to vector<16xf32>
    %13 = vector.shape_cast %12 : vector<16xf32> to vector<16x1xf32>
    %cst_11 = arith.constant dense<0.000000e+00> : vector<1xf32>
    %14 = vector.multi_reduction <add>, %13, %cst_11 [0] : vector<16x1xf32> to vector<1xf32>
    %15 = vector.shape_cast %14 : vector<1xf32> to vector<1x1xf32>
    %cst_12 = arith.constant 7.812500e-03 : f32
    %16 = vector.broadcast %cst_12 : f32 to vector<1x1xf32>
    %17 = arith.mulf %15, %16 : vector<1x1xf32>
    %18 = vector.broadcast %17 : vector<1x1xf32> to vector<16x8xf32>
    %19 = arith.subf %11, %18 : vector<16x8xf32>
    %20 = arith.mulf %19, %19 : vector<16x8xf32>
    %cst_13 = arith.constant dense<0.000000e+00> : vector<16xf32>
    %21 = vector.multi_reduction <add>, %20, %cst_13 [1] : vector<16x8xf32> to vector<16xf32>
    %22 = vector.shape_cast %21 : vector<16xf32> to vector<16x1xf32>
    %cst_14 = arith.constant dense<0.000000e+00> : vector<1xf32>
    %23 = vector.multi_reduction <add>, %22, %cst_14 [0] : vector<16x1xf32> to vector<1xf32>
    %24 = vector.shape_cast %23 : vector<1xf32> to vector<1x1xf32>
    %cst_15 = arith.constant 7.812500e-03 : f32
    %25 = vector.broadcast %cst_15 : f32 to vector<1x1xf32>
    %26 = arith.mulf %24, %25 : vector<1x1xf32>
    %c0_16 = arith.constant 0 : index
    %27 = memref.load %arg5[%c0_16] : memref<2xf32, #tpu.memory_space<smem>>
    %c1 = arith.constant 1 : index
    %28 = memref.load %arg5[%c1] : memref<2xf32, #tpu.memory_space<smem>>
    %cst_17 = arith.constant 9.99999974E-6 : f32
    %29 = vector.broadcast %cst_17 : f32 to vector<1x1xf32>
    %30 = arith.addf %26, %29 : vector<1x1xf32>
    %31 = math.rsqrt %30 : vector<1x1xf32>
    %32 = vector.broadcast %27 : f32 to vector<1x1xf32>
    %33 = arith.mulf %31, %32 : vector<1x1xf32>
    %34 = vector.broadcast %33 : vector<1x1xf32> to vector<16x8xf32>
    %35 = arith.mulf %19, %34 : vector<16x8xf32>
    %36 = vector.broadcast %28 : f32 to vector<16x8xf32>
    %37 = arith.addf %35, %36 : vector<16x8xf32>
    %c0_18 = arith.constant 0 : index
    %c0_19 = arith.constant 0 : index
    %38 = vector.load %arg6[%c0_18, %c0_19] : memref<16x8xf32, #tpu.memory_space<vmem>>, vector<16x8xf32>
    tpu.vector_store %arg6[%c0_18, %c0_19], %37 {strides = array<i32>} : memref<16x8xf32, #tpu.memory_space<vmem>>, vector<16x8xf32>,
    return
  }
  func.func @transform_0(%arg0: i32) -> (i32, i32) {
    %c0_i32 = arith.constant 0 : i32
    %c0_i32_0 = arith.constant 0 : i32
    %c0_i32_1 = arith.constant 0 : i32
    return %c0_i32, %c0_i32_0 : i32, i32
  }
  func.func @transform_1(%arg0: i32) -> (i32, i32, i32) {
    %c0_i32 = arith.constant 0 : i32
    %c0_i32_0 = arith.constant 0 : i32
    %c0_i32_1 = arith.constant 0 : i32
    %c0_i32_2 = arith.constant 0 : i32
    return %c0_i32, %c0_i32_0, %c0_i32_1 : i32, i32, i32
  }
  func.func @transform_2(%arg0: i32) -> (i32, i32, i32) {
    %c0_i32 = arith.constant 0 : i32
    %c0_i32_0 = arith.constant 0 : i32
    %c0_i32_1 = arith.constant 0 : i32
    %c0_i32_2 = arith.constant 0 : i32
    return %c0_i32, %c0_i32_0, %c0_i32_1 : i32, i32, i32
  }
  func.func @transform_3(%arg0: i32) -> (i32, i32) {
    %c0_i32 = arith.constant 0 : i32
    %c0_i32_0 = arith.constant 0 : i32
    %c0_i32_1 = arith.constant 0 : i32
    return %c0_i32, %c0_i32_0 : i32, i32
  }
  func.func @transform_4(%arg0: i32) -> i32 {
    %c0_i32 = arith.constant 0 : i32
    %c0_i32_0 = arith.constant 0 : i32
    return %c0_i32 : i32
  }
  func.func @transform_5(%arg0: i32) -> (i32, i32) {
    %c0_i32 = arith.constant 0 : i32
    %c0_i32_0 = arith.constant 0 : i32
    %c0_i32_1 = arith.constant 0 : i32
    return %c0_i32, %c0_i32_0 : i32, i32
  }
}

</mosaic_0001>

<bundles_post_ra>
// kernel: tpu_custom_call.1
= control target key start
LH: loop header
LB: loop body
LE: loop exit
PB: predicated region body
PF: predicated region fallthrough
CT: control target
= control target key end

     0   :  { %10 = vsyncpa [#allocation3], 0  ;;  %s367_s0 = inlined_call_operand.vmem [shape: f32[4,32], index: 0, kind: input, shape index: {}]   ;;  %s368_s1 = inlined_call_operand.vmem [shape: f32[1,8,4], index: 1, kind: input, shape index: {}]   ;;  %s369_s2 = inlined_call_operand.vmem [shape: f32[1,16,8], index: 2, kind: input, shape index: {}]   ;;  %s370_s3 = inlined_call_operand.vmem [shape: f32[16,8], index: 3, kind: input, shape index: {}]   ;;  %s371_s4 = inlined_call_operand.vmem [shape: f32[2], index: 4, kind: input, shape index: {}]   ;;  %s372_s5 = inlined_call_operand.vmem [shape: f32[16,8], index: 5, kind: output, shape index: {}]  }
   0x1   :  { %s25_s20 = sshll.u32 %s371_s4, 4  ;;  %s26_s20 = int_to_ptr.vmem [resolvable:$true] %s25_s20 }
   0x2   :  { %s286_s21 = scalar_lea.vmem %s26_s20, 16  ;;  %p291_p1 = scmp.lt.s32.totalorder %s26_s20, %s26_s20 }
   0x3   :  { %p287_p0 = scmp.ne.s32.totalorder %s26_s20, %s286_s21  ;;  %p292_p2 = scmp.lt.s32.totalorder %s286_s21, %s286_s21 }
   0x5   :  { %p293_p3 = por %p292_p2, %p291_p1 }
   0x7   :  { %p294_p4 = pnand %p293_p3, %p287_p0 }
   0x9   :  { %297 = shalt.err (!%p294_p4)
}
   0xa   :  { %s300_s22 = smov [#allocation2]  }
   0xb   :  { %28 = dma.vmem_to_smem %s26_s20, 16, %s300_s22, [#allocation3]  }
   0xc   :  { %298 = dma.done.wait [#allocation3], 16  }
   0xd   :  { %299 = vsyncadd [#allocation3], 4294967280 }
   0xe   :  { %32 = sfence }
   0xf   :  { %v33_v0 = vld [vmem:[%s367_s0] sm:$0xf]  ;;  %vm39_vm0 = vcmask 1043456   ;;  %v301_v2 = vmov 0.0   ;;  %vm302_vm1 = vmmov 0   ;;  %vm35_vm2 = vcmask 31744  }
  0x10   :  { %v34_v1 = vld [vmem:[%s368_s1] sm:$0xff]  ;;  %264 = vmatprep.subr.mxu0 %v301_v2  ;;  %266 = vmatprep.mubr.msk.f32.mxu0 %vm302_vm1, %v301_v2  ;;  %v119_v4 = vld [vmem:[%s369_s2 + $0x8] sm:$0xff]  ;;  %vm120_vm3 = vcmask 130048   ;;  %s303_s0 = smov 112   ;;  %vm202_vm4 = vcmask 64512  }
  0x11   :  { %265 = vmatpush3.msk.msra.mxu0 %vm39_vm0, %v33_v0  ;;  %v118_v3 = vld [vmem:[%s369_s2] sm:$0xff]  ;;  %v114_v9 = vld [vmem:[%s370_s3 + $0x8] sm:$0xff]  ;;  %s235_s2 = sld [smem:[#allocation2]] }
  0x12   :  { %267 = vmatmul.mubr.msk.f32.vlgmr.msra.gmra.mrb[0].mxu0 %vm35_vm2, %v34_v1  ;;  %v276_v5 = vpack.c.bf16 %v119_v4, %v118_v3  ;;  %v113_v10 = vld [vmem:[%s370_s3] sm:$0xff]  ;;  %s257_s3 = sld [smem:[#allocation2 + $0x1]] }
  0x14   :  { %277 = vmatprep.subr.bf16.mxu1 %v276_v5 }
  0x15   :  { %279 = vmatpush3.bf16.msra.mxu1 %v276_v5 }
  0x17   :  { %v239_v44 = vstv %s235_s2 }
  0x18   :  { %v243_v47 = vstv %s257_s3 }
  0xe5   :  { %v109_v6 = vpop.f32.mrb[0].mxu0 }
  0xe6   :  { %116 = vrot.lane.b32.xlu0 %v109_v6, %s303_s0  ;;  %v268_v7 = vpop.f32.mrb[1].mxu0  ;;  %273 = vmatprep.mubr.msk.f32.mxu1 %vm120_vm3, %v109_v6 }
 0x158   :  { %v117_v8 = vpop.permute.xlu0 %116 }
 0x159   :  { %274 = vmatmul.mubr.msk.f32.vlgmr.msra.gmra.mrb[0].mxu1 %vm120_vm3, %v117_v8 }
 0x22c   :  { %v275_v11 = vpop.f32.mrb[0].mxu1 }
 0x22d   :  { %v201_v12 = vadd.f32 %v275_v11, %v114_v9  ;;  %v191_v13 = vpop.f32.mrb[1].mxu1 }
 0x22e   :  { %v200_v14 = vadd.f32 %v191_v13, %v113_v10 }
 0x22f   :  { %v206_v15 = vsel %vm202_vm4, %v201_v12, 0.0 }
 0x230   :  { %207 = vadd.xlane.f32.xlu1 %v206_v15  ;;  %v203_v16 = vsel %vm202_vm4, %v200_v14, 0.0 }
 0x231   :  { %204 = vadd.xlane.f32.xlu0 %v203_v16 }
 0x2bd   :  { %v208_v17 = vpop.xlane.xlu1 %207 }
 0x2be   :  { %v205_v18 = vpop.xlane.xlu0 %204 }
 0x2bf   :  { %v209_v19 = vadd.f32 %v208_v17, %v205_v18 }
 0x2c1   :  { %v210_v20 = vrot.slane %v209_v19, 4 }
 0x2c3   :  { %v211_v21 = vadd.f32 %v210_v20, %v209_v19 }
 0x2c5   :  { %v212_v22 = vrot.slane %v211_v21, 2 }
 0x2c7   :  { %v213_v23 = vadd.f32 %v212_v22, %v211_v21 }
 0x2c9   :  { %v214_v24 = vrot.slane %v213_v23, 1 }
 0x2cb   :  { %v215_v25 = vadd.f32 %v214_v24, %v213_v23 }
 0x2cd   :  { %v216_v26 = vmul.f32 0.0078125, %v215_v25 }
 0x2cf   :  { %v217_v27 = vsub.f32 %v200_v14, %v216_v26  ;;  %v218_v28 = vsub.f32 %v201_v12, %v216_v26 }
 0x2d1   :  { %v219_v29 = vmul.f32 %v217_v27, %v217_v27  ;;  %v220_v31 = vmul.f32 %v218_v28, %v218_v28 }
 0x2d3   :  { %v221_v30 = vsel %vm202_vm4, %v219_v29, 0.0  ;;  %v224_v32 = vsel %vm202_vm4, %v220_v31, 0.0 }
 0x2d4   :  { %222 = vadd.xlane.f32.xlu1 %v221_v30 }
 0x2d8   :  { %225 = vadd.xlane.f32.xlu1 %v224_v32 }
 0x361   :  { %v223_v33 = vpop.xlane.xlu1 %222 }
 0x365   :  { %v226_v34 = vpop.xlane.xlu1 %225 }
 0x366   :  { %v227_v35 = vadd.f32 %v226_v34, %v223_v33 }
 0x368   :  { %v228_v36 = vrot.slane %v227_v35, 4 }
 0x36a   :  { %v229_v37 = vadd.f32 %v228_v36, %v227_v35 }
 0x36c   :  { %v230_v38 = vrot.slane %v229_v37, 2 }
 0x36e   :  { %v231_v39 = vadd.f32 %v230_v38, %v229_v37 }
 0x370   :  { %v232_v40 = vrot.slane %v231_v39, 1 }
 0x372   :  { %v233_v41 = vadd.f32 %v232_v40, %v231_v39 }
 0x374   :  { %v234_v42 = vmul.f32 0.0078125, %v233_v41 }
 0x376   :  { %v237_v43 = vadd.f32 1e-05, %v234_v42 }
 0x378   :  { %284 = vrsqrt.f32 %v237_v43 }
 0x382   :  { %v285_v45 = vpop.eup %284 }
 0x383   :  { %v240_v46 = vmul.f32 %v285_v45, %v239_v44 }
 0x385   :  { %v241_v48 = vmul.f32 %v240_v46, %v217_v27  ;;  %v242_v49 = vmul.f32 %v240_v46, %v218_v28 }
 0x387   :  { %v244_v50 = vadd.f32 %v243_v47, %v241_v48  ;;  %v245_v51 = vadd.f32 %v243_v47, %v242_v49 }
 0x389   :  { %246 = vst.msk [vmem:[%s372_s5] sm:$0xff] %vm202_vm4, %v244_v50  ;;  %247 = vst.msk [vmem:[%s372_s5 + $0x8] sm:$0xff] %vm202_vm4, %v245_v51 }
 0x38a   :  { %252 = vsyncpa [#allocation3], 1 }

</bundles_post_ra>
